<compile_context>
chip_gen: v5e
topology: v5e:2x2
jax: 0.10.0
libtpu: 0.0.40
codegen_flags: <defaults>
</compile_context>

<pallas_src>
import jax
import jax.numpy as jnp
from jax.experimental import pallas as pl
from jax.experimental.pallas import tpu as pltpu

# Network sizes for layers = [32, 32, 16, 10].
D_IN = 28 * 28          # 784, after Flatten(1, 3)
H1 = 32                 # Linear(784, layers[0])
H2 = 16                 # Linear(layers[1], layers[2])
H3 = 10                 # Linear(layers[2], layers[3])
H3_PAD = 16             # sublane-padded output rows used inside the kernel

# Packed-parameter layout: one (32, 128) f32 tile holding everything except W1.
P_ROWS, P_COLS = 32, 128
W2_R, W2_C = 0, 0                   # rows 0:16,  cols 0:32   -> W2 (16, 32)
W3_R, W3_C = H2, H1                 # rows 16:32, cols 32:48  -> W3 padded to (16, 16)
B1_COL, B2_COL, B3_COL = 64, 65, 66  # bias columns (lengths 32 / 16 / 16-padded)


def custom_mnist_kernel(x_ref, w1_ref, p_ref, o_ref):
    """One batch tile.  x_ref: (784, TN), w1_ref: (32, 784), p_ref: (32, 128) packed
    small params, o_ref: (16, TN).  Batch is on the lane axis -> lane-dense stores."""
    x = x_ref[...]                                   # (784, TN)
    w1 = w1_ref[...]                                 # (32, 784)
    p = p_ref[...]                                   # (32, 128)

    w2 = p[W2_R:W2_R + H2, W2_C:W2_C + H1]           # (16, 32)
    w3 = p[W3_R:W3_R + H3_PAD, W3_C:W3_C + H2]       # (16, 16); rows 10:16 are zero
    b1 = p[0:H1, B1_COL:B1_COL + 1]                  # (32, 1)
    b2 = p[0:H2, B2_COL:B2_COL + 1]                  # (16, 1)
    b3 = p[0:H3_PAD, B3_COL:B3_COL + 1]              # (16, 1); rows 10:16 are zero

    # Linear(784, 32) -- no activation after it in the original Sequential.
    h = jnp.dot(w1, x, preferred_element_type=jnp.float32) + b1       # (32, TN)
    # Linear(32, 16) + ReLU
    h = jnp.dot(w2, h, preferred_element_type=jnp.float32) + b2       # (16, TN)
    h = jnp.maximum(h, 0.0)
    # Linear(16, 10), computed at 16 padded rows (rows 10:16 are exactly zero).
    out = jnp.dot(w3, h, preferred_element_type=jnp.float32) + b3     # (16, TN)
    o_ref[...] = out.astype(o_ref.dtype)


def pack_small_params(params):
    """Collapse w2, w3, b1, b2, b3 into one (32, 128) f32 tile (one DMA)."""
    buf = jnp.zeros((P_ROWS, P_COLS), jnp.float32)
    buf = buf.at[W2_R:W2_R + H2, W2_C:W2_C + H1].set(params["w2"])
    buf = buf.at[W3_R:W3_R + H3, W3_C:W3_C + H2].set(params["w3"])
    buf = buf.at[0:H1, B1_COL].set(params["b1"])
    buf = buf.at[0:H2, B2_COL].set(params["b2"])
    buf = buf.at[0:H3, B3_COL].set(params["b3"])
    return buf


def custom_mnist_forward(x, params, *, block_n=256):
    """x: (N, 1, 28, 28) float32.  Returns (N, 10) float32."""
    assert block_n % 128 == 0, "lane-axis batch tile must be a multiple of 128"
    n = x.shape[0]
    x_t = x.reshape(n, D_IN).T                        # Flatten(1,3), then batch -> lanes: (784, N)
    n_pad = pl.cdiv(n, block_n) * block_n
    if n_pad != n:
        x_t = jnp.pad(x_t, ((0, 0), (0, n_pad - n)))  # zero-padded columns are discarded later
    p_small = pack_small_params(params)

    out_t = pl.pallas_call(
        custom_mnist_kernel,
        out_shape=jax.ShapeDtypeStruct((H3_PAD, n_pad), jnp.float32),
        grid_spec=pltpu.PrefetchScalarGridSpec(
            num_scalar_prefetch=0,
            grid=(n_pad // block_n,),
            in_specs=[
                pl.BlockSpec((D_IN, block_n), lambda i: (0, i)),      # x: tiled along lanes
                pl.BlockSpec((H1, D_IN), lambda i: (0, 0)),           # W1: grid-invariant
                pl.BlockSpec((P_ROWS, P_COLS), lambda i: (0, 0)),     # packed small params
            ],
            out_specs=pl.BlockSpec((H3_PAD, block_n), lambda i: (0, i)),
        ),
        compiler_params=pltpu.CompilerParams(
            dimension_semantics=("parallel",),        # batch tiles independent (no BN in forward)
            vmem_limit_bytes=32 * 1024 * 1024,        # fits v7x (64 MiB/TC) as well as v5e/v6e
        ),
    )(x_t, params["w1"], p_small)

    return out_t[:H3, :n].T                           # back to PyTorch (N, 10) layout


def init_params(key):
    """PyTorch default nn.Linear init: U(-1/sqrt(fan_in), +1/sqrt(fan_in)).
    Weights stored as (out, in) exactly like torch; kernel computes W @ x."""
    def linear(k, fan_in, fan_out):
        kw, kb = jax.random.split(k)
        bound = 1.0 / jnp.sqrt(jnp.float32(fan_in))
        w = jax.random.uniform(kw, (fan_out, fan_in), jnp.float32, -bound, bound)
        b = jax.random.uniform(kb, (fan_out,), jnp.float32, -bound, bound)
        return w, b

    k1, k2, k3 = jax.random.split(key, 3)
    w1, b1 = linear(k1, D_IN, H1)
    w2, b2 = linear(k2, H1, H2)
    w3, b3 = linear(k3, H2, H3)
    return {"w1": w1, "b1": b1, "w2": w2, "b2": b2, "w3": w3, "b3": b3}


def custom_mnist_reference(x, p):
    """Pure-JAX reference of the same forward pass (PyTorch (N, features) layout)."""
    hp = jax.lax.Precision.HIGHEST
    h = x.reshape(x.shape[0], -1)                          # Flatten(1, 3)
    h = jnp.dot(h, p["w1"].T, precision=hp) + p["b1"]      # Linear(784, 32)
    h = jnp.dot(h, p["w2"].T, precision=hp) + p["b2"]      # Linear(32, 16)
    h = jnp.maximum(h, 0.0)                                # ReLU
    h = jnp.dot(h, p["w3"].T, precision=hp) + p["b3"]      # Linear(16, 10)
    return h


if __name__ == "__main__":
    key = jax.random.PRNGKey(0)
    kx, kp = jax.random.split(key)

    N = 8
    x = jax.random.normal(kx, (N, 1, 28, 28), dtype=jnp.float32)
    params = init_params(kp)

    out = custom_mnist_forward(x, params)
    out = jax.block_until_ready(out)

    ref = custom_mnist_reference(x, params)
    assert out.shape == (N, H3)
    # Tolerance covers MXU f32 accumulation-order / precision-mode differences.
    assert jnp.allclose(out, ref, atol=5e-3, rtol=5e-3), (
        f"mismatch vs. reference: max abs err = {jnp.max(jnp.abs(out - ref))}")

    print("KERNEL_OK")
</pallas_src>

<mosaic_0001>
module attributes {stable_mosaic.version = 11 : i64} {
  func.func @custom_mnist_kernel(%arg0: i32, %arg1: memref<784x256xf32, #tpu.memory_space<vmem>>, %arg2: memref<32x784xf32, #tpu.memory_space<vmem>>, %arg3: memref<32x128xf32, #tpu.memory_space<vmem>>, %arg4: memref<16x256xf32, #tpu.memory_space<vmem>>) attributes {dimension_semantics = [#tpu.dimension_semantics<parallel>], iteration_bounds = array<i64: 1>, scalar_prefetch = 0 : i64, scratch_operands = 0 : i64, tpu.core_type = #tpu.core_type<tc>, window_params = [{transform_indices = @transform_0, window_bounds = array<i64: 784, 256>}, {pipeline_mode = #tpu.pipeline_mode<synchronous>, transform_indices = @transform_1, window_bounds = array<i64: 32, 784>}, {pipeline_mode = #tpu.pipeline_mode<synchronous>, transform_indices = @transform_2, window_bounds = array<i64: 32, 128>}, {transform_indices = @transform_3, window_bounds = array<i64: 16, 256>}]} {
    %c0 = arith.constant 0 : index
    %c0_0 = arith.constant 0 : index
    %0 = vector.load %arg1[%c0, %c0_0] : memref<784x256xf32, #tpu.memory_space<vmem>>, vector<784x256xf32>
    %c0_1 = arith.constant 0 : index
    %c0_2 = arith.constant 0 : index
    %1 = vector.load %arg2[%c0_1, %c0_2] : memref<32x784xf32, #tpu.memory_space<vmem>>, vector<32x784xf32>
    %c0_3 = arith.constant 0 : index
    %c0_4 = arith.constant 0 : index
    %2 = vector.load %arg3[%c0_3, %c0_4] : memref<32x128xf32, #tpu.memory_space<vmem>>, vector<32x128xf32>
    %3 = vector.extract_strided_slice %2 {offsets = [0, 0], sizes = [16, 32], strides = [1, 1]} : vector<32x128xf32> to vector<16x32xf32>
    %4 = vector.extract_strided_slice %2 {offsets = [16, 32], sizes = [16, 16], strides = [1, 1]} : vector<32x128xf32> to vector<16x16xf32>
    %5 = vector.extract_strided_slice %2 {offsets = [0, 64], sizes = [32, 1], strides = [1, 1]} : vector<32x128xf32> to vector<32x1xf32>
    %6 = vector.extract_strided_slice %2 {offsets = [0, 65], sizes = [16, 1], strides = [1, 1]} : vector<32x128xf32> to vector<16x1xf32>
    %7 = vector.extract_strided_slice %2 {offsets = [0, 66], sizes = [16, 1], strides = [1, 1]} : vector<32x128xf32> to vector<16x1xf32>
    %cst = arith.constant dense<0.000000e+00> : vector<32x256xf32>
    %8 = tpu.matmul %1, %0, %cst {dimension_numbers = #tpu.dot_dimension_numbers<[1], [0], [0], [1], [0, 0, 1, 1], [], []>} : vector<32x784xf32>, vector<784x256xf32>, vector<32x256xf32> -> vector<32x256xf32>
    %9 = vector.broadcast %5 : vector<32x1xf32> to vector<32x256xf32>
    %10 = arith.addf %8, %9 : vector<32x256xf32>
    %cst_5 = arith.constant dense<0.000000e+00> : vector<16x256xf32>
    %11 = tpu.matmul %3, %10, %cst_5 {dimension_numbers = #tpu.dot_dimension_numbers<[1], [0], [0], [1], [0, 0, 1, 1], [], []>} : vector<16x32xf32>, vector<32x256xf32>, vector<16x256xf32> -> vector<16x256xf32>
    %12 = vector.broadcast %6 : vector<16x1xf32> to vector<16x256xf32>
    %13 = arith.addf %11, %12 : vector<16x256xf32>
    %cst_6 = arith.constant 0.000000e+00 : f32
    %14 = vector.broadcast %cst_6 : f32 to vector<16x256xf32>
    %15 = arith.maximumf %13, %14 : vector<16x256xf32>
    %cst_7 = arith.constant dense<0.000000e+00> : vector<16x256xf32>
    %16 = tpu.matmul %4, %15, %cst_7 {dimension_numbers = #tpu.dot_dimension_numbers<[1], [0], [0], [1], [0, 0, 1, 1], [], []>} : vector<16x16xf32>, vector<16x256xf32>, vector<16x256xf32> -> vector<16x256xf32>
    %17 = vector.broadcast %7 : vector<16x1xf32> to vector<16x256xf32>
    %18 = arith.addf %16, %17 : vector<16x256xf32>
    %c0_8 = arith.constant 0 : index
    %c0_9 = arith.constant 0 : index
    %19 = vector.load %arg4[%c0_8, %c0_9] : memref<16x256xf32, #tpu.memory_space<vmem>>, vector<16x256xf32>
    tpu.vector_store %arg4[%c0_8, %c0_9], %18 {strides = array<i32>} : memref<16x256xf32, #tpu.memory_space<vmem>>, vector<16x256xf32>,
    return
  }
  func.func @transform_0(%arg0: i32) -> (i32, i32) {
    %c0_i32 = arith.constant 0 : i32
    %c0_i32_0 = arith.constant 0 : i32
    return %c0_i32, %arg0 : i32, i32
  }
  func.func @transform_1(%arg0: i32) -> (i32, i32) {
    %c0_i32 = arith.constant 0 : i32
    %c0_i32_0 = arith.constant 0 : i32
    %c0_i32_1 = arith.constant 0 : i32
    return %c0_i32, %c0_i32_0 : i32, i32
  }
  func.func @transform_2(%arg0: i32) -> (i32, i32) {
    %c0_i32 = arith.constant 0 : i32
    %c0_i32_0 = arith.constant 0 : i32
    %c0_i32_1 = arith.constant 0 : i32
    return %c0_i32, %c0_i32_0 : i32, i32
  }
  func.func @transform_3(%arg0: i32) -> (i32, i32) {
    %c0_i32 = arith.constant 0 : i32
    %c0_i32_0 = arith.constant 0 : i32
    return %c0_i32, %arg0 : i32, i32
  }
}

</mosaic_0001>

<bundles_post_ra>
// kernel: tpu_custom_call.1
= control target key start
LH: loop header
LB: loop body
LE: loop exit
PB: predicated region body
PF: predicated region fallthrough
CT: control target
= control target key end

     0   :  { %8 = vsyncpa [#allocation3], 0  ;;  %s1233_s0 = inlined_call_operand.hbm [shape: f32[784,256], index: 0, kind: input, shape index: {}]   ;;  %s1234_s1 = inlined_call_operand.hbm [shape: f32[32,784], index: 1, kind: input, shape index: {}]   ;;  %s1235_s2 = inlined_call_operand.hbm [shape: f32[32,128], index: 2, kind: input, shape index: {}]   ;;  %s1236_s3 = inlined_call_operand.hbm [shape: f32[16,256], index: 3, kind: output, shape index: {}]  }
   0x1   :  { %9 = vsyncpa [#allocation6], 0  ;;  %s28_s14 = sshll.u32 %s1234_s1, 4  ;;  %s29_s14 = int_to_ptr.hbm [resolvable:$true] %s28_s14 }
   0x2   :  { %10 = vsyncpa [#allocation4], 0  ;;  %s1015_s15 = smov [#allocation5]   ;;  %s15_s19 = sshll.u32 %s1233_s0, 4  ;;  %s16_s19 = int_to_ptr.hbm [resolvable:$true] %s15_s19 }
   0x3   :  { %s30_s16 = sshll.u32 %s1015_s15, 4  ;;  %s1016_s20 = smov 896   ;;  %s31_s16 = int_to_ptr.vmem [resolvable:$true] %s30_s16 }
   0x4   :  { %s1017_s21 = smov 56   ;;  %s1018_s22 = smov [#allocation2]  }
   0x5   :  { %36 = dma.hbm_to_vmem [thread:$0]  %s29_s14, 3584, %s31_s16, [#allocation6], %s1016_s20, %s1016_s20, %s1017_s21  }
   0x6   :  { %s17_s23 = sshll.u32 %s1018_s22, 4  ;;  %s1019_s24 = smov 256   ;;  %s18_s23 = int_to_ptr.vmem [resolvable:$true] %s17_s23 }
   0x7   :  { %s1020_s25 = smov 16   ;;  %s41_s27 = sshll.u32 %s1235_s2, 4  ;;  %s42_s27 = int_to_ptr.hbm [resolvable:$true] %s41_s27 }
   0x8   :  { %23 = dma.hbm_to_vmem [thread:$0]  %s16_s19, 25088, %s18_s23, [#allocation3], %s1019_s24, %s1019_s24, %s1020_s25  }
   0x9   :  { %s1021_s28 = smov [#allocation7]   ;;  %s1022_s29 = smov 128  }
   0xa   :  { %s43_s0 = sshll.u32 %s1021_s28, 4  ;;  %s1023_s30 = smov 8   ;;  %s44_s0 = int_to_ptr.vmem [resolvable:$true] %s43_s0 }
   0xb   :  { %49 = dma.hbm_to_vmem [thread:$0]  %s42_s27, 512, %s44_s0, [#allocation6], %s1022_s29, %s1022_s29, %s1023_s30  }
   0xc   :  { %1009 = dma.done.wait [#allocation3], 25088  }
   0xd   :  { %1010 = vsyncadd [#allocation3], 4294942208 }
   0xe   :  { %1011 = dma.done.wait [#allocation6], 4096  }
   0xf   :  { %1012 = vsyncadd [#allocation6], 4294963200  ;;  %v92_v0 = vld [vmem:[#allocation2 + $0xf0] sm:$0xff]  ;;  %v90_v2 = vld [vmem:[#allocation2 + $0xe0] sm:$0xff]  ;;  %vm310_vm0 = vcmask 130048   ;;  %s1025_s2 = smov 96  }
  0x10   :  { %v156_v1 = vld [vmem:[#allocation2 + $0x2f0] sm:$0xff]  ;;  %323 = vmatpush.msra.mxu0 %v92_v0  ;;  %v154_v4 = vld [vmem:[#allocation2 + $0x2e0] sm:$0xff]  ;;  %vm737_vm1 = vcmask 261120   ;;  %s1028_s4 = smov [#allocation8]   ;;  %s864_s8 = sshll.u32 %s1236_s3, 4  ;;  %s865_s8 = int_to_ptr.hbm [resolvable:$true] %s864_s8 }
  0x11   :  { %381 = vmatpush.msra.mxu2 %v156_v1  ;;  %v124_v3 = vld [vmem:[#allocation2 + $0x1f0] sm:$0xff]  ;;  %v122_v7 = vld [vmem:[#allocation2 + $0x1e0] sm:$0xff]  ;;  %s862_s5 = sshll.u32 %s1028_s4, 4  ;;  %s863_s5 = int_to_ptr.vmem [resolvable:$true] %s862_s5 }
  0x12   :  { %v188_v5 = vld [vmem:[#allocation2 + $0x3f0] sm:$0xff]  ;;  %352 = vmatpush.msra.mxu1 %v124_v3  ;;  %324 = vmatpush.msra.mxu0 %v90_v2  ;;  %v186_v9 = vld [vmem:[#allocation2 + $0x3e0] sm:$0xff]  ;;  %v1067_v3 = vld [vmem:[#allocation5 + $0x8] sm:$0xff] }
  0x13   :  { %410 = vmatpush.msra.mxu3 %v188_v5  ;;  %v88_v6 = vld [vmem:[#allocation2 + $0xd0] sm:$0xff]  ;;  %382 = vmatpush.msra.mxu2 %v154_v4  ;;  %v86_v11 = vld [vmem:[#allocation2 + $0xc0] sm:$0xff]  ;;  %v1069_v4 = vld [vmem:[#allocation5 + $0x18] sm:$0xff] }
  0x14   :  { %v152_v8 = vld [vmem:[#allocation2 + $0x2d0] sm:$0xff]  ;;  %353 = vmatpush.msra.mxu1 %v122_v7  ;;  %v150_v12 = vld [vmem:[#allocation2 + $0x2c0] sm:$0xff]  ;;  %325 = vmatpush.msra.mxu0 %v88_v6  ;;  %v1071_v5 = vld [vmem:[#allocation7 + $0x8] sm:$0xff]  ;;  %v1024_v7 = vmov 64  }
  0x15   :  { %v120_v10 = vld [vmem:[#allocation2 + $0x1d0] sm:$0xff]  ;;  %411 = vmatpush.msra.mxu3 %v186_v9  ;;  %383 = vmatpush.msra.mxu2 %v152_v8  ;;  %v118_v14 = vld [vmem:[#allocation2 + $0x1c0] sm:$0xff]  ;;  %v93_v9 = vld [vmem:[#allocation2 + $0xf8] sm:$0xff] }
  0x16   :  { %v184_v13 = vld [vmem:[#allocation2 + $0x3d0] sm:$0xff]  ;;  %v182_v15 = vld [vmem:[#allocation2 + $0x3c0] sm:$0xff]  ;;  %354 = vmatpush.msra.mxu1 %v120_v10  ;;  %326 = vmatpush.msra.mxu0 %v86_v11 }
  0x17   :  { %412 = vmatpush.msra.mxu3 %v184_v13  ;;  %v84_v16 = vld [vmem:[#allocation2 + $0xb0] sm:$0xff]  ;;  %384 = vmatpush.msra.mxu2 %v150_v12  ;;  %v82_v20 = vld [vmem:[#allocation2 + $0xa0] sm:$0xff]  ;;  %v91_v12 = vld [vmem:[#allocation2 + $0xe8] sm:$0xff] }
  0x18   :  { %v148_v17 = vld [vmem:[#allocation2 + $0x2b0] sm:$0xff]  ;;  %355 = vmatpush.msra.mxu1 %v118_v14  ;;  %v146_v21 = vld [vmem:[#allocation2 + $0x2a0] sm:$0xff]  ;;  %327 = vmatpush.msra.mxu0 %v84_v16  ;;  %v1076_v14 = vld [vmem:[#allocation5 + $0x48] sm:$0xff] }
  0x19   :  { %v116_v18 = vld [vmem:[#allocation2 + $0x1b0] sm:$0xff]  ;;  %413 = vmatpush.msra.mxu3 %v182_v15  ;;  %385 = vmatpush.msra.mxu2 %v148_v17  ;;  %v114_v22 = vld [vmem:[#allocation2 + $0x1a0] sm:$0xff]  ;;  %v89_v16 = vld [vmem:[#allocation2 + $0xd8] sm:$0xff] }
  0x1a   :  { %v180_v19 = vld [vmem:[#allocation2 + $0x3b0] sm:$0xff]  ;;  %v178_v23 = vld [vmem:[#allocation2 + $0x3a0] sm:$0xff]  ;;  %356 = vmatpush.msra.mxu1 %v116_v18  ;;  %328 = vmatpush.msra.mxu0 %v82_v20  ;;  %v1078_v17 = vld [vmem:[#allocation5 + $0x38] sm:$0xff] }
  0x1b   :  { %414 = vmatpush.msra.mxu3 %v180_v19  ;;  %v80_v24 = vld [vmem:[#allocation2 + $0x90] sm:$0xff]  ;;  %386 = vmatpush.msra.mxu2 %v146_v21  ;;  %v78_v28 = vld [vmem:[#allocation2 + $0x80] sm:$0xff]  ;;  %v1080_v18 = vld [vmem:[#allocation7 + $0x18] sm:$0xff] }
  0x1c   :  { %v144_v25 = vld [vmem:[#allocation2 + $0x290] sm:$0xff]  ;;  %357 = vmatpush.msra.mxu1 %v114_v22  ;;  %v142_v29 = vld [vmem:[#allocation2 + $0x280] sm:$0xff]  ;;  %329 = vmatpush.msra.mxu0 %v80_v24  ;;  %v87_v21 = vld [vmem:[#allocation2 + $0xc8] sm:$0xff] }
  0x1d   :  { %v112_v26 = vld [vmem:[#allocation2 + $0x190] sm:$0xff]  ;;  %415 = vmatpush.msra.mxu3 %v178_v23  ;;  %387 = vmatpush.msra.mxu2 %v144_v25  ;;  %v110_v30 = vld [vmem:[#allocation2 + $0x180] sm:$0xff] }
  0x1e   :  { %v176_v27 = vld [vmem:[#allocation2 + $0x390] sm:$0xff]  ;;  %v174_v31 = vld [vmem:[#allocation2 + $0x380] sm:$0xff]  ;;  %358 = vmatpush.msra.mxu1 %v112_v26  ;;  %330 = vmatpush.msra.mxu0 %v78_v28 }
  0x1f   :  { %416 = vmatpush.msra.mxu3 %v176_v27  ;;  %v76_v32 = vld [vmem:[#allocation2 + $0x70] sm:$0xff]  ;;  %388 = vmatpush.msra.mxu2 %v142_v29  ;;  %v74_v36 = vld [vmem:[#allocation2 + $0x60] sm:$0xff]  ;;  %v85_v27 = vld [vmem:[#allocation2 + $0xb8] sm:$0xff] }
  0x20   :  { %v140_v33 = vld [vmem:[#allocation2 + $0x270] sm:$0xff]  ;;  %359 = vmatpush.msra.mxu1 %v110_v30  ;;  %v138_v37 = vld [vmem:[#allocation2 + $0x260] sm:$0xff]  ;;  %331 = vmatpush.msra.mxu0 %v76_v32 }
  0x21   :  { %v108_v34 = vld [vmem:[#allocation2 + $0x170] sm:$0xff]  ;;  %417 = vmatpush.msra.mxu3 %v174_v31  ;;  %389 = vmatpush.msra.mxu2 %v140_v33  ;;  %v106_v38 = vld [vmem:[#allocation2 + $0x160] sm:$0xff]  ;;  %v83_v31 = vld [vmem:[#allocation2 + $0xa8] sm:$0xff] }
  0x22   :  { %v172_v35 = vld [vmem:[#allocation2 + $0x370] sm:$0xff]  ;;  %v170_v39 = vld [vmem:[#allocation2 + $0x360] sm:$0xff]  ;;  %360 = vmatpush.msra.mxu1 %v108_v34  ;;  %332 = vmatpush.msra.mxu0 %v74_v36 }
  0x23   :  { %418 = vmatpush.msra.mxu3 %v172_v35  ;;  %v72_v40 = vld [vmem:[#allocation2 + $0x50] sm:$0xff]  ;;  %390 = vmatpush.msra.mxu2 %v138_v37  ;;  %v70_v44 = vld [vmem:[#allocation2 + $0x40] sm:$0xff]  ;;  %v81_v35 = vld [vmem:[#allocation2 + $0x98] sm:$0xff] }
  0x24   :  { %v136_v41 = vld [vmem:[#allocation2 + $0x250] sm:$0xff]  ;;  %361 = vmatpush.msra.mxu1 %v106_v38  ;;  %v134_v45 = vld [vmem:[#allocation2 + $0x240] sm:$0xff]  ;;  %333 = vmatpush.msra.mxu0 %v72_v40  ;;  %v1099_v40 = vld [vmem:[#allocation5 + $0x78] sm:$0xff] }
  0x25   :  { %v104_v42 = vld [vmem:[#allocation2 + $0x150] sm:$0xff]  ;;  %419 = vmatpush.msra.mxu3 %v170_v39  ;;  %391 = vmatpush.msra.mxu2 %v136_v41  ;;  %v102_v46 = vld [vmem:[#allocation2 + $0x140] sm:$0xff]  ;;  %v79_v39 = vld [vmem:[#allocation2 + $0x88] sm:$0xff] }
  0x26   :  { %v168_v43 = vld [vmem:[#allocation2 + $0x350] sm:$0xff]  ;;  %v166_v47 = vld [vmem:[#allocation2 + $0x340] sm:$0xff]  ;;  %362 = vmatpush.msra.mxu1 %v104_v42  ;;  %334 = vmatpush.msra.mxu0 %v70_v44  ;;  %v1102_v41 = vld [vmem:[#allocation5 + $0x88] sm:$0xff] }
  0x27   :  { %420 = vmatpush.msra.mxu3 %v168_v43  ;;  %v68_v48 = vld [vmem:[#allocation2 + $0x30] sm:$0xff]  ;;  %392 = vmatpush.msra.mxu2 %v134_v45  ;;  %v66_v52 = vld [vmem:[#allocation2 + $0x20] sm:$0xff]  ;;  %v77_v44 = vld [vmem:[#allocation2 + $0x78] sm:$0xff] }
  0x28   :  { %v132_v49 = vld [vmem:[#allocation2 + $0x230] sm:$0xff]  ;;  %363 = vmatpush.msra.mxu1 %v102_v46  ;;  %v130_v53 = vld [vmem:[#allocation2 + $0x220] sm:$0xff]  ;;  %335 = vmatpush.msra.mxu0 %v68_v48  ;;  %v75_v48 = vld [vmem:[#allocation2 + $0x68] sm:$0xff] }
  0x29   :  { %v100_v50 = vld [vmem:[#allocation2 + $0x130] sm:$0xff]  ;;  %421 = vmatpush.msra.mxu3 %v166_v47  ;;  %393 = vmatpush.msra.mxu2 %v132_v49  ;;  %v98_v54 = vld [vmem:[#allocation2 + $0x120] sm:$0xff] }
  0x2a   :  { %v164_v51 = vld [vmem:[#allocation2 + $0x330] sm:$0xff]  ;;  %v162_v55 = vld [vmem:[#allocation2 + $0x320] sm:$0xff]  ;;  %364 = vmatpush.msra.mxu1 %v100_v50  ;;  %336 = vmatpush.msra.mxu0 %v66_v52  ;;  %v1108_v50 = vld [vmem:[#allocation5 + $0xb8] sm:$0xff] }
  0x2b   :  { %422 = vmatpush.msra.mxu3 %v164_v51  ;;  %v64_v56 = vld [vmem:[#allocation2 + $0x10] sm:$0xff]  ;;  %394 = vmatpush.msra.mxu2 %v130_v53  ;;  %v62_v60 = vld [vmem:[#allocation2] sm:$0xff]  ;;  %v73_v52 = vld [vmem:[#allocation2 + $0x58] sm:$0xff] }
  0x2c   :  { %v128_v57 = vld [vmem:[#allocation2 + $0x210] sm:$0xff]  ;;  %365 = vmatpush.msra.mxu1 %v98_v54  ;;  %v126_v61 = vld [vmem:[#allocation2 + $0x200] sm:$0xff]  ;;  %337 = vmatpush.msra.mxu0 %v64_v56  ;;  %v1111_v53 = vld [vmem:[#allocation5 + $0xa8] sm:$0xff] }
  0x2d   :  { %v96_v58 = vld [vmem:[#allocation2 + $0x110] sm:$0xff]  ;;  %423 = vmatpush.msra.mxu3 %v162_v55  ;;  %395 = vmatpush.msra.mxu2 %v128_v57  ;;  %v1061_v62 = vld [vmem:[#allocation5] sm:$0xff]  ;;  %v71_v57 = vld [vmem:[#allocation2 + $0x48] sm:$0xff] }
  0x2e   :  { %v160_v59 = vld [vmem:[#allocation2 + $0x310] sm:$0xff]  ;;  %366 = vmatpush.msra.mxu1 %v96_v58  ;;  %v94_v0 = vld [vmem:[#allocation2 + $0x100] sm:$0xff]  ;;  %338 = vmatpush.msra.mxu0 %v62_v60 }
  0x2f   :  { %v1063_v63 = vld [vmem:[#allocation5 + $0x10] sm:$0xff]  ;;  %424 = vmatpush.msra.mxu3 %v160_v59  ;;  %v158_v1 = vld [vmem:[#allocation2 + $0x300] sm:$0xff]  ;;  %396 = vmatpush.msra.mxu2 %v126_v61 }
  0x30   :  { %v220_v2 = vld [vmem:[#allocation2 + $0x4f0] sm:$0xff]  ;;  %339 = vmatmul.f32.vlgmr.msra.gmra.mxu0 %v1061_v62  ;;  %397 = vmatmul.f32.vlgmr.msra.gmra.mxu2 %v1063_v63  ;;  %v218_v6 = vld [vmem:[#allocation2 + $0x4e0] sm:$0xff] }
  0x31   :  { %367 = vmatpush.msra.mxu1 %v94_v0  ;;  %425 = vmatpush.msra.mxu3 %v158_v1  ;;  %v252_v8 = vld [vmem:[#allocation2 + $0x5f0] sm:$0xff]  ;;  %v250_v11 = vld [vmem:[#allocation2 + $0x5e0] sm:$0xff]  ;;  %v69_v0 = vld [vmem:[#allocation2 + $0x38] sm:$0xff] }
  0x32   :  { %439 = vmatpush.msrb.mxu0 %v220_v2  ;;  %909 = vset.pattern.permute.xlu1 %v1024_v7  ;;  %v216_v10 = vld [vmem:[#allocation2 + $0x4d0] sm:$0xff]  ;;  %v214_v13 = vld [vmem:[#allocation2 + $0x4c0] sm:$0xff]  ;;  %v189_v2 = vld [vmem:[#allocation2 + $0x3f8] sm:$0xff] }
  0x33   :  { %368 = vmatmul.f32.vlgmr.msra.gmra.mxu1 %v1067_v3  ;;  %426 = vmatmul.f32.vlgmr.msra.gmra.mxu3 %v1069_v4  ;;  %v248_v15 = vld [vmem:[#allocation2 + $0x5d0] sm:$0xff]  ;;  %v246_v20 = vld [vmem:[#allocation2 + $0x5c0] sm:$0xff] }
  0x34   :  { %297 = vperm.xlu1 %909, %v1071_v5   ;;  %440 = vmatpush.msrb.mxu0 %v218_v6  ;;  %v212_v19 = vld [vmem:[#allocation2 + $0x4b0] sm:$0xff]  ;;  %v1083_v22 = vld [vmem:[#allocation5 + $0x40] sm:$0xff] }
  0x35   :  { %468 = vmatpush.msrb.mxu1 %v252_v8  ;;  %526 = vmatpush.msrb.mxu3 %v93_v9  ;;  %v1086_v23 = vld [vmem:[#allocation5 + $0x50] sm:$0xff]  ;;  %v1088_v24 = vld [vmem:[#allocation7] sm:$0xff] }
  0x36   :  { %441 = vmatpush.msrb.mxu0 %v216_v10  ;;  %908 = vset.pattern.permute.xlu0 %v1024_v7  ;;  %v210_v25 = vld [vmem:[#allocation2 + $0x4a0] sm:$0xff]  ;;  %v244_v26 = vld [vmem:[#allocation2 + $0x5b0] sm:$0xff]  ;;  %v67_v7 = vld [vmem:[#allocation2 + $0x28] sm:$0xff] }
  0x37   :  { %469 = vmatpush.msrb.mxu1 %v250_v11  ;;  %527 = vmatpush.msrb.mxu3 %v91_v12  ;;  %v256_v28 = vld [vmem:[#allocation2 + $0x610] sm:$0xff]  ;;  %v242_v30 = vld [vmem:[#allocation2 + $0x5a0] sm:$0xff]  ;;  %v65_v11 = vld [vmem:[#allocation2 + $0x18] sm:$0xff] }
  0x38   :  { %442 = vmatpush.msrb.mxu0 %v214_v13  ;;  %400 = vmatmul.f32.gmra.mxu2 %v1076_v14  ;;  %v208_v29 = vld [vmem:[#allocation2 + $0x490] sm:$0xff]  ;;  %v1094_v32 = vld [vmem:[#allocation5 + $0x80] sm:$0xff]  ;;  %v187_v13 = vld [vmem:[#allocation2 + $0x3e8] sm:$0xff] }
  0x39   :  { %470 = vmatpush.msrb.mxu1 %v248_v15  ;;  %528 = vmatpush.msrb.mxu3 %v89_v16  ;;  %v206_v33 = vld [vmem:[#allocation2 + $0x480] sm:$0xff]  ;;  %v240_v34 = vld [vmem:[#allocation2 + $0x590] sm:$0xff]  ;;  %v63_v16 = vld [vmem:[#allocation2 + $0x8] sm:$0xff] }
  0x3a   :  { %342 = vmatmul.f32.gmra.mxu0 %v1078_v17  ;;  %307 = vperm.xlu0 %908, %v1080_v18   ;;  %v1096_v36 = vld [vmem:[#allocation5 + $0x70] sm:$0xff]  ;;  %v238_v38 = vld [vmem:[#allocation2 + $0x580] sm:$0xff] }
  0x3b   :  { %443 = vmatpush.msrb.mxu0 %v212_v19  ;;  %471 = vmatpush.msrb.mxu1 %v246_v20  ;;  %v204_v37 = vld [vmem:[#allocation2 + $0x470] sm:$0xff]  ;;  %v202_v42 = vld [vmem:[#allocation2 + $0x460] sm:$0xff]  ;;  %v125_v19 = vld [vmem:[#allocation2 + $0x1f8] sm:$0xff] }
  0x3c   :  { %529 = vmatpush.msrb.mxu3 %v87_v21  ;;  %371 = vmatmul.f32.gmra.mxu1 %v1083_v22  ;;  %v236_v43 = vld [vmem:[#allocation2 + $0x570] sm:$0xff]  ;;  %v234_v47 = vld [vmem:[#allocation2 + $0x560] sm:$0xff]  ;;  %v1127_v20 = vld [vmem:[#allocation5 + $0x28] sm:$0xff] }
  0x3d   :  { %429 = vmatmul.f32.gmra.mxu3 %v1086_v23  ;;  %292 = vperm.xlu1 %909, %v1088_v24   ;;  %v200_v45 = vld [vmem:[#allocation2 + $0x450] sm:$0xff]  ;;  %v198_v49 = vld [vmem:[#allocation2 + $0x440] sm:$0xff]  ;;  %v157_v21 = vld [vmem:[#allocation2 + $0x2f8] sm:$0xff] }
  0x3e   :  { %444 = vmatpush.msrb.mxu0 %v210_v25  ;;  %472 = vmatpush.msrb.mxu1 %v244_v26  ;;  %v1105_v46 = vld [vmem:[#allocation7 + $0x10] sm:$0xff]  ;;  %v254_v54 = vld [vmem:[#allocation2 + $0x600] sm:$0xff]  ;;  %v123_v25 = vld [vmem:[#allocation2 + $0x1e8] sm:$0xff] }
  0x3f   :  { %530 = vmatpush.msrb.mxu3 %v85_v27  ;;  %511 = vmatpush.msrb.mxu2 %v256_v28  ;;  %v232_v51 = vld [vmem:[#allocation2 + $0x550] sm:$0xff]  ;;  %v230_v56 = vld [vmem:[#allocation2 + $0x540] sm:$0xff]  ;;  %v221_v26 = vld [vmem:[#allocation2 + $0x4f8] sm:$0xff] }
  0x40   :  { %445 = vmatpush.msrb.mxu0 %v208_v29  ;;  %473 = vmatpush.msrb.mxu1 %v242_v30  ;;  %v196_v55 = vld [vmem:[#allocation2 + $0x430] sm:$0xff]  ;;  %v1117_v59 = vld [vmem:[#allocation5 + $0xc0] sm:$0xff]  ;;  %v155_v27 = vld [vmem:[#allocation2 + $0x2e8] sm:$0xff] }
  0x41   :  { %531 = vmatpush.msrb.mxu3 %v83_v31  ;;  %403 = vmatmul.f32.gmra.mxu2 %v1094_v32  ;;  %v1114_v58 = vld [vmem:[#allocation5 + $0xb0] sm:$0xff]  ;;  %v194_v60 = vld [vmem:[#allocation2 + $0x420] sm:$0xff]  ;;  %v185_v28 = vld [vmem:[#allocation2 + $0x3d8] sm:$0xff] }
  0x42   :  { %446 = vmatpush.msrb.mxu0 %v206_v33  ;;  %474 = vmatpush.msrb.mxu1 %v240_v34  ;;  %v228_v61 = vld [vmem:[#allocation2 + $0x530] sm:$0xff]  ;;  %v226_v6 = vld [vmem:[#allocation2 + $0x520] sm:$0xff]  ;;  %v121_v29 = vld [vmem:[#allocation2 + $0x1d8] sm:$0xff] }
  0x43   :  { %532 = vmatpush.msrb.mxu3 %v81_v35  ;;  %345 = vmatmul.f32.gmra.mxu0 %v1096_v36  ;;  %v192_v1 = vld [vmem:[#allocation2 + $0x410] sm:$0xff]  ;;  %v190_v8 = vld [vmem:[#allocation2 + $0x400] sm:$0xff]  ;;  %v219_v30 = vld [vmem:[#allocation2 + $0x4e8] sm:$0xff] }
  0x44   :  { %447 = vmatpush.msrb.mxu0 %v204_v37  ;;  %475 = vmatpush.msrb.mxu1 %v238_v38  ;;  %v1121_v9 = vld [vmem:[#allocation5 + $0x30] sm:$0xff]  ;;  %v1123_v12 = vld [vmem:[#allocation5 + $0x20] sm:$0xff]  ;;  %v153_v31 = vld [vmem:[#allocation2 + $0x2d8] sm:$0xff] }
  0x45   :  { %533 = vmatpush.msrb.mxu3 %v79_v39  ;;  %374 = vmatmul.f32.gmra.mxu1 %v1099_v40  ;;  %v224_v10 = vld [vmem:[#allocation2 + $0x510] sm:$0xff]  ;;  %v222_v15 = vld [vmem:[#allocation2 + $0x500] sm:$0xff]  ;;  %v183_v33 = vld [vmem:[#allocation2 + $0x3c8] sm:$0xff] }
  0x46   :  { %432 = vmatmul.f32.gmra.mxu3 %v1102_v41  ;;  %448 = vmatpush.msrb.mxu0 %v202_v42  ;;  %v119_v34 = vld [vmem:[#allocation2 + $0x1c8] sm:$0xff]  ;;  %v217_v35 = vld [vmem:[#allocation2 + $0x4d8] sm:$0xff] }
  0x47   :  { %476 = vmatpush.msrb.mxu1 %v236_v43  ;;  %534 = vmatpush.msrb.mxu3 %v77_v44  ;;  %v1132_v37 = vld [vmem:[#allocation5 + $0x58] sm:$0xff]  ;;  %v1134_v38 = vld [vmem:[#allocation5 + $0x68] sm:$0xff]  ;;  %v1139_v44 = vld [vmem:[#allocation5 + $0x60] sm:$0xff] }
  0x48   :  { %449 = vmatpush.msrb.mxu0 %v200_v45  ;;  %302 = vperm.xlu0 %908, %v1105_v46   ;;  %v151_v39 = vld [vmem:[#allocation2 + $0x2c8] sm:$0xff]  ;;  %v181_v42 = vld [vmem:[#allocation2 + $0x3b8] sm:$0xff] }
  0x49   :  { %477 = vmatpush.msrb.mxu1 %v234_v47  ;;  %535 = vmatpush.msrb.mxu3 %v75_v48  ;;  %v215_v43 = vld [vmem:[#allocation2 + $0x4c8] sm:$0xff]  ;;  %v149_v47 = vld [vmem:[#allocation2 + $0x2b8] sm:$0xff] }
  0x4a   :  { %450 = vmatpush.msrb.mxu0 %v198_v49  ;;  %406 = vmatmul.f32.gmra.mxu2 %v1108_v50  ;;  %v115_v45 = vld [vmem:[#allocation2 + $0x1a8] sm:$0xff]  ;;  %v213_v49 = vld [vmem:[#allocation2 + $0x4b8] sm:$0xff] }
  0x4b   :  { %478 = vmatpush.msrb.mxu1 %v232_v51  ;;  %536 = vmatpush.msrb.mxu3 %v73_v52  ;;  %v179_v48 = vld [vmem:[#allocation2 + $0x3a8] sm:$0xff]  ;;  %v113_v51 = vld [vmem:[#allocation2 + $0x198] sm:$0xff] }
  0x4c   :  { %348 = vmatmul.f32.gmra.mxu0 %v1111_v53  ;;  %512 = vmatpush.msrb.mxu2 %v254_v54  ;;  %v147_v52 = vld [vmem:[#allocation2 + $0x2a8] sm:$0xff]  ;;  %v177_v54 = vld [vmem:[#allocation2 + $0x398] sm:$0xff] }
  0x4d   :  { %451 = vmatpush.msrb.mxu0 %v196_v55  ;;  %479 = vmatpush.msrb.mxu1 %v230_v56  ;;  %v211_v55 = vld [vmem:[#allocation2 + $0x4a8] sm:$0xff] }
  0x4e   :  { %537 = vmatpush.msrb.mxu3 %v71_v57  ;;  %377 = vmatmul.f32.gmra.mxu1 %v1114_v58  ;;  %v111_v56 = vld [vmem:[#allocation2 + $0x188] sm:$0xff]  ;;  %v145_v57 = vld [vmem:[#allocation2 + $0x298] sm:$0xff] }
  0x4f   :  { %435 = vmatmul.f32.gmra.mxu3 %v1117_v59  ;;  %452 = vmatpush.msrb.mxu0 %v194_v60  ;;  %v175_v60 = vld [vmem:[#allocation2 + $0x388] sm:$0xff] }
  0x50   :  { %480 = vmatpush.msrb.mxu1 %v228_v61  ;;  %538 = vmatpush.msrb.mxu3 %v69_v0  ;;  %v209_v61 = vld [vmem:[#allocation2 + $0x498] sm:$0xff]  ;;  %v1143_v0 = vld [vmem:[#allocation5 + $0x90] sm:$0xff] }
  0x51   :  { %453 = vmatpush.msrb.mxu0 %v192_v1  ;;  %613 = vmatpush.msra.mxu2 %v189_v2  ;;  %v1145_v1 = vld [vmem:[#allocation5 + $0xa0] sm:$0xff]  ;;  %v143_v2 = vld [vmem:[#allocation2 + $0x288] sm:$0xff] }
  0x52   :  { %481 = vmatpush.msrb.mxu1 %v226_v6  ;;  %539 = vmatpush.msrb.mxu3 %v67_v7  ;;  %v173_v6 = vld [vmem:[#allocation2 + $0x378] sm:$0xff]  ;;  %v207_v7 = vld [vmem:[#allocation2 + $0x488] sm:$0xff] }
  0x53   :  { %454 = vmatpush.msrb.mxu0 %v190_v8  ;;  %878 = vmatmul.msk.f32.vlgmr.msrb.gmra.mxu2 %vm310_vm0, %v1121_v9  ;;  %v1150_v8 = vld [vmem:[#allocation5 + $0x98] sm:$0xff] }
  0x54   :  { %482 = vmatpush.msrb.mxu1 %v224_v10  ;;  %540 = vmatpush.msrb.mxu3 %v65_v11  ;;  %v107_v10 = vld [vmem:[#allocation2 + $0x168] sm:$0xff]  ;;  %v141_v11 = vld [vmem:[#allocation2 + $0x278] sm:$0xff] }
  0x55   :  { %455 = vmatmul.f32.vlgmr.msrb.gmra.mxu0 %v1123_v12  ;;  %614 = vmatpush.msra.mxu2 %v187_v13  ;;  %v171_v13 = vld [vmem:[#allocation2 + $0x368] sm:$0xff] }
  0x56   :  { %483 = vmatpush.msrb.mxu1 %v222_v15  ;;  %541 = vmatpush.msrb.mxu3 %v63_v16  ;;  %v205_v15 = vld [vmem:[#allocation2 + $0x478] sm:$0xff] }
  0x57   :  { %555 = vmatpush.msra.mxu0 %v125_v19  ;;  %484 = vmatmul.f32.vlgmr.msrb.gmra.mxu1 %v1127_v20  ;;  %v105_v16 = vld [vmem:[#allocation2 + $0x158] sm:$0xff]  ;;  %v139_v19 = vld [vmem:[#allocation2 + $0x268] sm:$0xff] }
  0x58   :  { %542 = vmatmul.f32.vlgmr.msrb.gmra.mxu3 %v1061_v62  ;;  %584 = vmatpush.msra.mxu1 %v157_v21  ;;  %v117_v62 = vld [vmem:[#allocation2 + $0x1b8] sm:$0xff] }
  0x59   :  { %556 = vmatpush.msra.mxu0 %v123_v25  ;;  %642 = vmatpush.msra.mxu3 %v221_v26  ;;  %v169_v21 = vld [vmem:[#allocation2 + $0x358] sm:$0xff]  ;;  %v203_v25 = vld [vmem:[#allocation2 + $0x468] sm:$0xff] }
  0x5a   :  { %585 = vmatpush.msra.mxu1 %v155_v27  ;;  %615 = vmatpush.msra.mxu2 %v185_v28  ;;  %v103_v26 = vld [vmem:[#allocation2 + $0x148] sm:$0xff]  ;;  %v137_v27 = vld [vmem:[#allocation2 + $0x258] sm:$0xff] }
  0x5b   :  { %557 = vmatpush.msra.mxu0 %v121_v29  ;;  %643 = vmatpush.msra.mxu3 %v219_v30  ;;  %v167_v28 = vld [vmem:[#allocation2 + $0x348] sm:$0xff]  ;;  %v201_v29 = vld [vmem:[#allocation2 + $0x458] sm:$0xff] }
  0x5c   :  { %586 = vmatpush.msra.mxu1 %v153_v31  ;;  %616 = vmatpush.msra.mxu2 %v183_v33  ;;  %v1154_v30 = vld [vmem:[#allocation5 + $0xc8] sm:$0xff]  ;;  %v1156_v31 = vld [vmem:[#allocation5 + $0xd8] sm:$0xff] }
  0x5d   :  { %558 = vmatpush.msra.mxu0 %v119_v34  ;;  %644 = vmatpush.msra.mxu3 %v217_v35  ;;  %v135_v33 = vld [vmem:[#allocation2 + $0x248] sm:$0xff]  ;;  %v165_v34 = vld [vmem:[#allocation2 + $0x338] sm:$0xff] }
  0x5e   :  { %458 = vmatmul.f32.gmra.mxu0 %v1132_v37  ;;  %879 = vmatmul.msk.f32.gmra.mxu2 %vm310_vm0, %v1134_v38  ;;  %v199_v35 = vld [vmem:[#allocation2 + $0x448] sm:$0xff] }
  0x5f   :  { %559 = vmatpush.msra.mxu0 %v117_v62  ;;  %587 = vmatpush.msra.mxu1 %v151_v39  ;;  %v1161_v62 = vld [vmem:[#allocation5 + $0xd0] sm:$0xff]  ;;  %v99_v39 = vld [vmem:[#allocation2 + $0x128] sm:$0xff] }
  0x60   :  { %617 = vmatpush.msra.mxu2 %v181_v42  ;;  %645 = vmatpush.msra.mxu3 %v215_v43  ;;  %v133_v42 = vld [vmem:[#allocation2 + $0x238] sm:$0xff]  ;;  %v163_v43 = vld [vmem:[#allocation2 + $0x328] sm:$0xff] }
  0x61   :  { %487 = vmatmul.f32.gmra.mxu1 %v1139_v44  ;;  %545 = vmatmul.f32.gmra.mxu3 %v1078_v17  ;;  %v109_v17 = vld [vmem:[#allocation2 + $0x178] sm:$0xff] }
  0x62   :  { %560 = vmatpush.msra.mxu0 %v115_v45  ;;  %588 = vmatpush.msra.mxu1 %v149_v47  ;;  %v197_v45 = vld [vmem:[#allocation2 + $0x438] sm:$0xff] }
  0x63   :  { %618 = vmatpush.msra.mxu2 %v179_v48  ;;  %646 = vmatpush.msra.mxu3 %v213_v49  ;;  %v97_v47 = vld [vmem:[#allocation2 + $0x118] sm:$0xff]  ;;  %v131_v48 = vld [vmem:[#allocation2 + $0x228] sm:$0xff] }
  0x64   :  { %561 = vmatpush.msra.mxu0 %v113_v51  ;;  %589 = vmatpush.msra.mxu1 %v147_v52  ;;  %v161_v49 = vld [vmem:[#allocation2 + $0x318] sm:$0xff]  ;;  %v195_v51 = vld [vmem:[#allocation2 + $0x428] sm:$0xff] }
  0x65   :  { %619 = vmatpush.msra.mxu2 %v177_v54  ;;  %647 = vmatpush.msra.mxu3 %v211_v55  ;;  %v95_v52 = vld [vmem:[#allocation2 + $0x108] sm:$0xff]  ;;  %v129_v54 = vld [vmem:[#allocation2 + $0x218] sm:$0xff] }
  0x66   :  { %562 = vmatpush.msra.mxu0 %v111_v56  ;;  %590 = vmatpush.msra.mxu1 %v145_v57  ;;  %v159_v55 = vld [vmem:[#allocation2 + $0x308] sm:$0xff]  ;;  %v193_v56 = vld [vmem:[#allocation2 + $0x418] sm:$0xff] }
  0x67   :  { %620 = vmatpush.msra.mxu2 %v175_v60  ;;  %648 = vmatpush.msra.mxu3 %v209_v61  ;;  %v127_v57 = vld [vmem:[#allocation2 + $0x208] sm:$0xff]  ;;  %v253_v60 = vld [vmem:[#allocation2 + $0x5f8] sm:$0xff] }
  0x68   :  { %461 = vmatmul.f32.gmra.mxu0 %v1143_v0  ;;  %880 = vmatmul.msk.f32.gmra.mxu2 %vm310_vm0, %v1145_v1  ;;  %v257_v61 = vld [vmem:[#allocation2 + $0x618] sm:$0xff] }
  0x69   :  { %563 = vmatpush.msra.mxu0 %v109_v17  ;;  %591 = vmatpush.msra.mxu1 %v143_v2  ;;  %v251_v17 = vld [vmem:[#allocation2 + $0x5e8] sm:$0xff] }
  0x6a   :  { %621 = vmatpush.msra.mxu2 %v173_v6  ;;  %649 = vmatpush.msra.mxu3 %v207_v7  ;;  %v255_v2 = vld [vmem:[#allocation2 + $0x608] sm:$0xff]  ;;  %v249_v6 = vld [vmem:[#allocation2 + $0x5d8] sm:$0xff] }
  0x6b   :  { %490 = vmatmul.f32.gmra.mxu1 %v1150_v8  ;;  %548 = vmatmul.f32.gmra.mxu3 %v1096_v36  ;;  %v101_v36 = vld [vmem:[#allocation2 + $0x138] sm:$0xff]  ;;  %v247_v7 = vld [vmem:[#allocation2 + $0x5c8] sm:$0xff] }
  0x6c   :  { %564 = vmatpush.msra.mxu0 %v107_v10  ;;  %592 = vmatpush.msra.mxu1 %v141_v11  ;;  %v245_v10 = vld [vmem:[#allocation2 + $0x5b8] sm:$0xff]  ;;  %v235_v11 = vld [vmem:[#allocation2 + $0x568] sm:$0xff] }
  0x6d   :  { %622 = vmatpush.msra.mxu2 %v171_v13  ;;  %650 = vmatpush.msra.mxu3 %v205_v15 }
  0x6e   :  { %565 = vmatpush.msra.mxu0 %v105_v16  ;;  %593 = vmatpush.msra.mxu1 %v139_v19 }
  0x6f   :  { %623 = vmatpush.msra.mxu2 %v169_v21  ;;  %651 = vmatpush.msra.mxu3 %v203_v25 }
  0x70   :  { %566 = vmatpush.msra.mxu0 %v103_v26  ;;  %594 = vmatpush.msra.mxu1 %v137_v27 }
  0x71   :  { %624 = vmatpush.msra.mxu2 %v167_v28  ;;  %652 = vmatpush.msra.mxu3 %v201_v29 }
  0x72   :  { %464 = vmatmul.f32.gmra.mxu0 %v1154_v30  ;;  %881 = vmatmul.msk.f32.gmra.mxu2 %vm310_vm0, %v1156_v31 }
  0x73   :  { %567 = vmatpush.msra.mxu0 %v101_v36  ;;  %595 = vmatpush.msra.mxu1 %v135_v33 }
  0x74   :  { %625 = vmatpush.msra.mxu2 %v165_v34  ;;  %653 = vmatpush.msra.mxu3 %v199_v35 }
  0x75   :  { %493 = vmatmul.f32.gmra.mxu1 %v1161_v62  ;;  %551 = vmatmul.f32.gmra.mxu3 %v1111_v53  ;;  %v191_v53 = vld [vmem:[#allocation2 + $0x408] sm:$0xff] }
  0x76   :  { %568 = vmatpush.msra.mxu0 %v99_v39  ;;  %596 = vmatpush.msra.mxu1 %v133_v42 }
  0x77   :  { %626 = vmatpush.msra.mxu2 %v163_v43  ;;  %654 = vmatpush.msra.mxu3 %v197_v45 }
  0x78   :  { %569 = vmatpush.msra.mxu0 %v97_v47  ;;  %597 = vmatpush.msra.mxu1 %v131_v48 }
  0x79   :  { %627 = vmatpush.msra.mxu2 %v161_v49  ;;  %655 = vmatpush.msra.mxu3 %v195_v51 }
  0x7a   :  { %570 = vmatpush.msra.mxu0 %v95_v52  ;;  %598 = vmatpush.msra.mxu1 %v129_v54 }
  0x7b   :  { %628 = vmatpush.msra.mxu2 %v159_v55  ;;  %656 = vmatpush.msra.mxu3 %v193_v56 }
  0x7c   :  { %571 = vmatmul.f32.vlgmr.msra.gmra.mxu0 %v1067_v3  ;;  %629 = vmatmul.f32.vlgmr.msra.gmra.mxu2 %v1069_v4  ;;  %v243_v3 = vld [vmem:[#allocation2 + $0x5a8] sm:$0xff] }
  0x7d   :  { %599 = vmatpush.msra.mxu1 %v127_v57  ;;  %657 = vmatpush.msra.mxu3 %v191_v53  ;;  %v239_v4 = vld [vmem:[#allocation2 + $0x588] sm:$0xff] }
  0x7e   :  { %671 = vmatpush.msrb.mxu0 %v253_v60  ;;  %600 = vmatmul.f32.vlgmr.msra.gmra.mxu1 %v1063_v63  ;;  %v241_v63 = vld [vmem:[#allocation2 + $0x598] sm:$0xff] }
  0x7f   :  { %658 = vmatmul.f32.vlgmr.msra.gmra.mxu3 %v1123_v12  ;;  %714 = vmatpush.msrb.mxu1 %v257_v61  ;;  %v237_v12 = vld [vmem:[#allocation2 + $0x578] sm:$0xff] }
  0x80   :  { %672 = vmatpush.msrb.mxu0 %v251_v17  ;;  %800 = vrot.lane.b32.xlu0 %v1105_v46, %s1025_s2 }
  0x81   :  { %715 = vmatpush.msrb.mxu1 %v255_v2  ;;  %802 = vrot.lane.b32.xlu1 %v1080_v18, %s1025_s2 }
  0x82   :  { %673 = vmatpush.msrb.mxu0 %v249_v6 }
  0x84   :  { %674 = vmatpush.msrb.mxu0 %v247_v7  ;;  %632 = vmatmul.f32.gmra.mxu2 %v1086_v23  ;;  %v229_v23 = vld [vmem:[#allocation2 + $0x538] sm:$0xff] }
  0x85   :  { %574 = vmatmul.f32.gmra.mxu0 %v1083_v22  ;;  %v233_v22 = vld [vmem:[#allocation2 + $0x558] sm:$0xff] }
  0x86   :  { %675 = vmatpush.msrb.mxu0 %v245_v10  ;;  %603 = vmatmul.f32.gmra.mxu1 %v1076_v14  ;;  %v231_v14 = vld [vmem:[#allocation2 + $0x548] sm:$0xff] }
  0x87   :  { %661 = vmatmul.f32.gmra.mxu3 %v1132_v37  ;;  %v227_v37 = vld [vmem:[#allocation2 + $0x528] sm:$0xff] }
  0x88   :  { %676 = vmatpush.msrb.mxu0 %v243_v3 }
  0x8a   :  { %677 = vmatpush.msrb.mxu0 %v241_v63 }
  0x8c   :  { %678 = vmatpush.msrb.mxu0 %v239_v4  ;;  %635 = vmatmul.f32.gmra.mxu2 %v1102_v41 }
  0x8d   :  { %577 = vmatmul.f32.gmra.mxu0 %v1099_v40  ;;  %v225_v40 = vld [vmem:[#allocation2 + $0x518] sm:$0xff] }
  0x8e   :  { %679 = vmatpush.msrb.mxu0 %v237_v12  ;;  %606 = vmatmul.f32.gmra.mxu1 %v1094_v32  ;;  %v223_v32 = vld [vmem:[#allocation2 + $0x508] sm:$0xff] }
  0x8f   :  { %664 = vmatmul.f32.gmra.mxu3 %v1143_v0 }
  0x90   :  { %680 = vmatpush.msrb.mxu0 %v235_v11 }
  0x92   :  { %681 = vmatpush.msrb.mxu0 %v233_v22 }
  0x94   :  { %682 = vmatpush.msrb.mxu0 %v231_v14  ;;  %638 = vmatmul.f32.gmra.mxu2 %v1117_v59 }
  0x95   :  { %580 = vmatmul.f32.gmra.mxu0 %v1114_v58 }
  0x96   :  { %683 = vmatpush.msrb.mxu0 %v229_v23  ;;  %609 = vmatmul.f32.gmra.mxu1 %v1108_v50 }
  0x97   :  { %667 = vmatmul.f32.gmra.mxu3 %v1154_v30 }
  0x98   :  { %684 = vmatpush.msrb.mxu0 %v227_v37 }
  0x9a   :  { %685 = vmatpush.msrb.mxu0 %v225_v40 }
  0x9c   :  { %686 = vmatpush.msrb.mxu0 %v223_v32 }
  0x9d   :  { %687 = vmatmul.f32.vlgmr.msrb.gmra.mxu0 %v1127_v20 }
  0x9e   :  { %882 = vmatmul.msk.f32.vlgmr.msrb.gmra.mxu1 %vm310_vm0, %v1121_v9 }
  0xa5   :  { %690 = vmatmul.f32.gmra.mxu0 %v1139_v44 }
  0xa6   :  { %883 = vmatmul.msk.f32.gmra.mxu1 %vm310_vm0, %v1134_v38  ;;  %v1197_v29 = vpop.permute.xlu1 %297 }
  0xac   :  { %v1195_v27 = vpop.permute.xlu0 %307 }
  0xad   :  { %693 = vmatmul.f32.gmra.mxu0 %v1150_v8  ;;  %v340_v41 = vpop.f32.mrf.mxu0 }
  0xae   :  { %884 = vmatmul.msk.f32.gmra.mxu1 %vm310_vm0, %v1145_v1 }
  0xaf   :  { %v1203_v35 = vpop.permute.xlu1 %292 }
  0xb0   :  { %v369_v50 = vpop.f32.mrf.mxu1  ;;  %v341_v45 = vadd.f32 %v340_v41, %v1203_v35 }
  0xb2   :  { %v370_v54 = vadd.f32 %v369_v50, %v341_v45 }
  0xb3   :  { %v398_v58 = vpop.f32.mrf.mxu2 }
  0xb4   :  { %v399_v53 = vadd.f32 %v398_v58, %v370_v54 }
  0xb5   :  { %696 = vmatmul.f32.gmra.mxu0 %v1161_v62 }
  0xb6   :  { %885 = vmatmul.msk.f32.gmra.mxu1 %vm310_vm0, %v1156_v31  ;;  %v427_v44 = vpop.f32.mrf.mxu3 }
  0xb7   :  { %v343_v59 = vpop.f32.mrf.mxu0  ;;  %v428_v10 = vadd.f32 %v427_v44, %v399_v53 }
  0xb8   :  { %v344_v62 = vadd.f32 %v343_v59, %v1197_v29 }
  0xb9   :  { %v372_v9 = vpop.f32.mrf.mxu1 }
  0xba   :  { %v1199_v33 = vpop.permute.xlu0 %302  ;;  %v373_v51 = vadd.f32 %v372_v9, %v344_v62 }
  0xbb   :  { %v401_v20 = vpop.f32.mrf.mxu2 }
  0xbc   :  { %v402_v55 = vadd.f32 %v401_v20, %v373_v51 }
  0xc0   :  { %v346_v0 = vpop.f32.mrf.mxu0  ;;  %v430_v8 = vpop.f32.mrf.mxu3 }
  0xc1   :  { %v347_v34 = vadd.f32 %v346_v0, %v1199_v33  ;;  %v431_v17 = vadd.f32 %v430_v8, %v402_v55 }
  0xc2   :  { %v375_v13 = vpop.f32.mrf.mxu1 }
  0xc3   :  { %v376_v47 = vadd.f32 %v375_v13, %v347_v34 }
  0xc4   :  { %v404_v38 = vpop.f32.mrf.mxu2 }
  0xc5   :  { %v405_v52 = vadd.f32 %v404_v38, %v376_v47 }
  0xc9   :  { %v349_v1 = vpop.f32.mrf.mxu0  ;;  %v433_v21 = vpop.f32.mrf.mxu3 }
  0xca   :  { %v350_v18 = vadd.f32 %v349_v1, %v1195_v27  ;;  %v434_v60 = vadd.f32 %v433_v21, %v405_v52 }
  0xcb   :  { %v378_v15 = vpop.f32.mrf.mxu1 }
  0xcc   :  { %v379_v39 = vadd.f32 %v378_v15, %v350_v18 }
  0xcd   :  { %v407_v16 = vpop.f32.mrf.mxu2 }
  0xce   :  { %v408_v48 = vadd.f32 %v407_v16, %v379_v39  ;;  %v1026_v39 = vmov 65  }
  0xcf   :  { %910 = vset.pattern.permute.xlu2 %v1026_v39 }
  0xd0   :  { %734 = vperm.xlu2 %910, %v1071_v5  }
  0xd2   :  { %v456_v19 = vpop.f32.mrf.mxu0  ;;  %v436_v30 = vpop.f32.mrf.mxu3 }
  0xd3   :  { %v437_v56 = vadd.f32 %v436_v30, %v408_v48  ;;  %v457_v12 = vadd.f32 %v456_v19, %v428_v10 }
  0xd4   :  { %v485_v25 = vpop.f32.mrf.mxu1 }
  0xd5   :  { %v486_v40 = vadd.f32 %v485_v25, %v457_v12 }
  0xd6   :  { %v514_v26 = vpop.f32.mrf.mxu2 }
  0xd7   :  { %v515_v50 = vadd.f32 %v514_v26, %v486_v40 }
  0xd8   :  { %730 = vperm.xlu2 %910, %v1088_v24  }
  0xdb   :  { %v459_v28 = vpop.f32.mrf.mxu0  ;;  %v543_v42 = vpop.f32.mrf.mxu3 }
  0xdc   :  { %v460_v3 = vadd.f32 %v459_v28, %v431_v17 }
  0xde   :  { %v488_v31 = vpop.f32.mrf.mxu1 }
  0xdf   :  { %v489_v14 = vadd.f32 %v488_v31, %v460_v3 }
  0xe1   :  { %v517_v36 = vpop.f32.mrf.mxu2 }
  0xe2   :  { %v518_v32 = vadd.f32 %v517_v36, %v489_v14 }
  0xe4   :  { %v546_v6 = vpop.f32.mrf.mxu3 }
  0xe5   :  { %v462_v46 = vpop.f32.mrf.mxu0  ;;  %v547_v18 = vadd.f32 %v546_v6, %v1197_v29 }
  0xe6   :  { %v463_v2 = vadd.f32 %v462_v46, %v434_v60  ;;  %v544_v46 = vadd.f32 %v543_v42, %v1203_v35 }
  0xe8   :  { %v491_v43 = vpop.f32.mrf.mxu1 }
  0xe9   :  { %v492_v11 = vadd.f32 %v491_v43, %v463_v2 }
  0xeb   :  { %v520_v49 = vpop.f32.mrf.mxu2 }
  0xec   :  { %v521_v23 = vadd.f32 %v520_v49, %v492_v11 }
  0xee   :  { %v549_v58 = vpop.f32.mrf.mxu3 }
  0xef   :  { %v465_v57 = vpop.f32.mrf.mxu0  ;;  %v550_v28 = vadd.f32 %v549_v58, %v1199_v33 }
  0xf0   :  { %v466_v61 = vadd.f32 %v465_v57, %v437_v56 }
  0xf2   :  { %v494_v7 = vpop.f32.mrf.mxu1 }
  0xf3   :  { %v495_v63 = vadd.f32 %v494_v7, %v466_v61  ;;  %v803_v58 = vpop.permute.xlu1 %802 }
  0xf5   :  { %v523_v4 = vpop.f32.mrf.mxu2 }
  0xf6   :  { %v524_v22 = vadd.f32 %v523_v4, %v495_v63 }
  0xf8   :  { %754 = vmatpush.msrb.mxu2 %v524_v22  ;;  %v552_v20 = vpop.f32.mrf.mxu3 }
  0xf9   :  { %v572_v37 = vpop.f32.mrf.mxu0  ;;  %v553_v30 = vadd.f32 %v552_v20, %v1195_v27 }
  0xfa   :  { %755 = vmatpush.msrb.mxu2 %v521_v23  ;;  %v573_v48 = vadd.f32 %v572_v37, %v544_v46 }
  0xfb   :  { %v601_v41 = vpop.f32.mrf.mxu1 }
  0xfc   :  { %756 = vmatpush.msrb.mxu2 %v518_v32  ;;  %v602_v29 = vadd.f32 %v601_v41, %v573_v48 }
  0xfe   :  { %757 = vmatpush.msrb.mxu2 %v515_v50  ;;  %v801_v50 = vpop.permute.xlu0 %800 }
  0xff   :  { %v630_v13 = vpop.f32.mrf.mxu2  ;;  %886 = vmatmul.msk.f32.vlgmr.msrb.gmra.mxu2 %vm737_vm1, %v1088_v24 }
 0x100   :  { %v631_v35 = vadd.f32 %v630_v13, %v602_v29 }
 0x102   :  { %v575_v59 = vpop.f32.mrf.mxu0  ;;  %v659_v38 = vpop.f32.mrf.mxu3 }
 0x103   :  { %v604_v9 = vpop.f32.mrf.mxu1  ;;  %v576_v43 = vadd.f32 %v575_v59, %v547_v18  ;;  %v660_v6 = vadd.f32 %v659_v38, %v631_v35  ;;  %v1027_v59 = vmov 66  }
 0x104   :  { %912 = vset.pattern.permute.xlu0 %v1027_v59  ;;  %911 = vset.pattern.permute.xlu2 %v1027_v59 }
 0x105   :  { %v605_v27 = vadd.f32 %v604_v9, %v576_v43  ;;  %797 = vperm.xlu0 %912, %v1071_v5   ;;  %793 = vperm.xlu2 %911, %v1088_v24  }
 0x107   :  { %v633_v15 = vpop.f32.mrf.mxu2  ;;  %887 = vmatmul.msk.f32.gmra.mxu2 %vm737_vm1, %v1071_v5 }
 0x108   :  { %v634_v56 = vadd.f32 %v633_v15, %v605_v27 }
 0x10a   :  { %v578_v44 = vpop.f32.mrf.mxu0  ;;  %v662_v16 = vpop.f32.mrf.mxu3 }
 0x10b   :  { %v607_v0 = vpop.f32.mrf.mxu1  ;;  %v579_v34 = vadd.f32 %v578_v44, %v550_v28  ;;  %v663_v60 = vadd.f32 %v662_v16, %v634_v56 }
 0x10d   :  { %v608_v49 = vadd.f32 %v607_v0, %v579_v34 }
 0x10f   :  { %v636_v25 = vpop.f32.mrf.mxu2 }
 0x110   :  { %v637_v52 = vadd.f32 %v636_v25, %v608_v49 }
 0x112   :  { %v581_v1 = vpop.f32.mrf.mxu0  ;;  %v665_v36 = vpop.f32.mrf.mxu3 }
 0x113   :  { %v610_v8 = vpop.f32.mrf.mxu1  ;;  %v582_v62 = vadd.f32 %v581_v1, %v553_v30  ;;  %v666_v42 = vadd.f32 %v665_v36, %v637_v52 }
 0x115   :  { %v611_v33 = vadd.f32 %v610_v8, %v582_v62 }
 0x117   :  { %v639_v45 = vpop.f32.mrf.mxu2 }
 0x118   :  { %v640_v54 = vadd.f32 %v639_v45, %v611_v33 }
 0x11a   :  { %v688_v19 = vpop.f32.mrf.mxu0  ;;  %v668_v55 = vpop.f32.mrf.mxu3 }
 0x11b   :  { %v717_v21 = vpop.f32.mrf.mxu1  ;;  %v669_v57 = vadd.f32 %v668_v55, %v640_v54  ;;  %v689_v3 = vadd.f32 %v688_v19, %v660_v6 }
 0x11d   :  { %v718_v12 = vadd.f32 %v717_v21, %v689_v3 }
 0x122   :  { %v691_v26 = vpop.f32.mrf.mxu0 }
 0x123   :  { %v720_v31 = vpop.f32.mrf.mxu1  ;;  %v692_v7 = vadd.f32 %v691_v26, %v663_v60 }
 0x125   :  { %v721_v4 = vadd.f32 %v720_v31, %v692_v7 }
 0x12a   :  { %v694_v47 = vpop.f32.mrf.mxu0  ;;  %v735_v22 = vpop.permute.xlu2 %734 }
 0x12b   :  { %v723_v51 = vpop.f32.mrf.mxu1  ;;  %v695_v61 = vadd.f32 %v694_v47, %v666_v42 }
 0x12d   :  { %v724_v63 = vadd.f32 %v723_v51, %v695_v61 }
 0x132   :  { %v697_v53 = vpop.f32.mrf.mxu0  ;;  %v731_v37 = vpop.permute.xlu2 %730 }
 0x133   :  { %v698_v17 = vadd.f32 %v697_v53, %v669_v57  ;;  %v726_v2 = vpop.f32.mrf.mxu1 }
 0x135   :  { %v727_v10 = vadd.f32 %v726_v2, %v698_v17 }
 0x137   :  { %777 = vmatpush.msrb.mxu3 %v727_v10 }
 0x139   :  { %778 = vmatpush.msrb.mxu3 %v724_v63 }
 0x13b   :  { %779 = vmatpush.msrb.mxu3 %v721_v4 }
 0x13d   :  { %780 = vmatpush.msrb.mxu3 %v718_v12 }
 0x13e   :  { %888 = vmatmul.msk.f32.vlgmr.msrb.gmra.mxu3 %vm737_vm1, %v1088_v24 }
 0x146   :  { %889 = vmatmul.msk.f32.gmra.mxu3 %vm737_vm1, %v1071_v5 }
 0x15f   :  { %v794_v1 = vpop.permute.xlu2 %793 }
 0x177   :  { %v798_v16 = vpop.permute.xlu0 %797 }
 0x182   :  { %v759_v11 = vpop.f32.mrf.mxu2 }
 0x183   :  { %v760_v32 = vadd.f32 %v759_v11, %v731_v37 }
 0x185   :  { %v788_v41 = vmax.f32 %v760_v32, 0.0 }
 0x18a   :  { %v762_v14 = vpop.f32.mrf.mxu2 }
 0x18b   :  { %v763_v23 = vadd.f32 %v762_v14, %v735_v22 }
 0x18d   :  { %v790_v40 = vmax.f32 %v763_v23, 0.0 }
 0x18f   :  { %822 = vmatpush.msra.mxu2 %v790_v40 }
 0x191   :  { %823 = vmatpush.msra.mxu2 %v788_v41 }
 0x192   :  { %890 = vmatmul.msk.f32.vlgmr.msra.gmra.mxu2 %vm310_vm0, %v801_v50 }
 0x19a   :  { %891 = vmatmul.msk.f32.gmra.mxu2 %vm310_vm0, %v803_v58 }
 0x1c1   :  { %v782_v9 = vpop.f32.mrf.mxu3 }
 0x1c2   :  { %v783_v0 = vadd.f32 %v782_v9, %v731_v37 }
 0x1c4   :  { %v789_v38 = vmax.f32 %v783_v0, 0.0 }
 0x1c9   :  { %v785_v20 = vpop.f32.mrf.mxu3 }
 0x1ca   :  { %v786_v44 = vadd.f32 %v785_v20, %v735_v22 }
 0x1cc   :  { %v791_v13 = vmax.f32 %v786_v44, 0.0 }
 0x1ce   :  { %845 = vmatpush.msra.mxu3 %v791_v13 }
 0x1d0   :  { %846 = vmatpush.msra.mxu3 %v789_v38 }
 0x1d1   :  { %892 = vmatmul.msk.f32.vlgmr.msra.gmra.mxu3 %vm310_vm0, %v801_v50 }
 0x1d9   :  { %893 = vmatmul.msk.f32.gmra.mxu3 %vm310_vm0, %v803_v58 }
 0x215   :  { %v825_v8 = vpop.f32.mrf.mxu2 }
 0x216   :  { %v826_v15 = vadd.f32 %v825_v8, %v794_v1 }
 0x218   :  { %854 = vst [vmem:[#allocation8] sm:$0xff] %v826_v15 }
 0x21d   :  { %v828_v5 = vpop.f32.mrf.mxu2 }
 0x21e   :  { %v829_v19 = vadd.f32 %v828_v5, %v798_v16 }
 0x220   :  { %856 = vst [vmem:[#allocation8 + $0x10] sm:$0xff] %v829_v19 }
 0x254   :  { %v848_v24 = vpop.f32.mrf.mxu3 }
 0x255   :  { %v849_v21 = vadd.f32 %v848_v24, %v794_v1 }
 0x257   :  { %855 = vst [vmem:[#allocation8 + $0x8] sm:$0xff] %v849_v21 }
 0x25c   :  { %v851_v25 = vpop.f32.mrf.mxu3 }
 0x25d   :  { %v852_v26 = vadd.f32 %v851_v25, %v798_v16 }
 0x25f   :  { %857 = vst [vmem:[#allocation8 + $0x18] sm:$0xff] %v852_v26 }
 0x260   :  { %870 = dma.vmem_to_hbm [thread:$0]  %s863_s5, 512, %s865_s8, [#allocation4], %s1019_s24, %s1019_s24, %s1020_s25  }
 0x261   :  { %1013 = dma.done.wait [#allocation4], 512  }
 0x262   :  { %1014 = vsyncadd [#allocation4], 4294966784 }
 0x263   :  { %875 = vsyncpa [#allocation3], 1 }
 0x264   :  { %876 = vsyncpa [#allocation6], 1 }
 0x265   :  { %877 = vsyncpa [#allocation4], 1 }

</bundles_post_ra>
